<compile_context>
chip_gen: v7x
topology: tpu7x:2x2x1
jax: 0.10.0
libtpu: 0.0.40
codegen_flags: <defaults>
</compile_context>

<pallas_src>
import functools

import jax
import jax.numpy as jnp
from jax import lax
from jax.experimental import pallas as pl
from jax.experimental.pallas import tpu as pltpu

HIDDEN_SIZE = 64
IN_FEATURES = 4      # len(CartPole-v0 observation_space.low)
ACTION_NUM = 2       # CartPole-v0 action_space.n

# Contract the last dim of both operands: dot_general(A, B) == A @ B^T.
_TRANS_B_DIMS = (((1,), (1,)), ((), ()))


def _round_up(x, m):
    return ((x + m - 1) // m) * m


def _device_kind():
    try:
        return jax.devices()[0].device_kind.lower()
    except Exception:
        return ""


def _is_pre_v6():
    # v5e (and older) have no bf16 VALU/EUP and only one vector-store slot.
    return any(g in _device_kind() for g in ("v2", "v3", "v4", "v5"))


def default_compute_dtype():
    return jnp.float32 if _is_pre_v6() else jnp.bfloat16


def default_block_b():
    # v5e: keep the tile ~2048 (single vst slot / f32 h); newer chips: 4096.
    return 2048 if _is_pre_v6() else 4096


def _mlp_kernel(x_ref, w1_ref, b1_ref, w2_ref, b2_ref, o_ref, *, compute_dtype):
    # x_ref : (TB, 4)   natural HBM layout (no wrapper transpose)
    # w1_ref: (64, 4)   compute_dtype   (PyTorch (out, in) layout)
    # b1_ref: (64, 1)   f32
    # w2_ref: (2, 64)   compute_dtype
    # b2_ref: (2, 1)    f32
    # o_ref : (2, TB)   f32, batch on the 128-lane axis -> lane-dense stores
    x = x_ref[...].astype(compute_dtype)                           # (TB, 4)

    # Layer 1 with the transpose fused into the MXU matmul:
    #   h^T = W1 @ x^T  ==  dot_general(W1, x) contracting both last dims.
    h = lax.dot_general(w1_ref[...], x, _TRANS_B_DIMS,
                        preferred_element_type=jnp.float32)        # (64, TB)
    h = (h + b1_ref[...]).astype(compute_dtype)

    # sigmoid(h) = 0.5 * tanh(0.5 * h) + 0.5  -> one EUP push per element;
    # the mul/add co-issue on spare VALU slots.
    h = (jnp.tanh(h * 0.5) * 0.5 + 0.5).astype(compute_dtype)

    # Layer 2 on the MXU (K = 64), f32 accumulation, lane-dense (2, TB) store.
    out = jnp.dot(w2_ref[...], h, preferred_element_type=jnp.float32)
    o_ref[...] = (out + b2_ref[...]).astype(o_ref.dtype)


def prepare_params(w1, b1, w2, b2, *, compute_dtype=None):
    """One-time reshape/cast from PyTorch layout to kernel layout.

    Call once at init / after a parameter update, NOT per forward call.
    PyTorch stores W as (out, in), which is exactly what the transposed
    formulation h^T = W1 @ x^T needs, so no weight transposes at all.
    """
    if compute_dtype is None:
        compute_dtype = default_compute_dtype()
    return (w1.astype(compute_dtype),                         # (64, 4)
            b1.reshape(HIDDEN_SIZE, 1).astype(jnp.float32),   # (64, 1)
            w2.astype(compute_dtype),                         # (2, 64)
            b2.reshape(ACTION_NUM, 1).astype(jnp.float32))    # (2, 1)


def mlp_forward(x, w1, b1_col, w2, b2_col, *, block_b=None):
    """x: (B, 4) f32.  Params in the layout produced by `prepare_params`.

    Returns (B, 2) f32, matching the PyTorch MLP.forward semantics.
    """
    B = x.shape[0]
    compute_dtype = w1.dtype
    if block_b is None:
        block_b = default_block_b()

    # Batch tile: multiple of 128 (lane width), big enough to amortize the
    # ~0.35 us per-grid-step overhead; clamped for small B.
    tb = min(_round_up(block_b, 128), _round_up(B, 128))
    # v7x has 2 TensorCores: if the grid would collapse to a single step,
    # halve the tile so both cores get work (no-op effect on v5e/v6e).
    if _round_up(B, tb) // tb < 2 and tb > 128:
        tb = _round_up(tb // 2, 128)
    bp = _round_up(B, tb)

    # Pad the batch only when it is not already a whole number of tiles.
    if bp != B:
        x = jnp.pad(x, ((0, bp - B), (0, 0)))

    kernel = functools.partial(_mlp_kernel, compute_dtype=compute_dtype)
    out_t = pl.pallas_call(
        kernel,
        out_shape=jax.ShapeDtypeStruct((ACTION_NUM, bp), jnp.float32),
        grid=(bp // tb,),
        in_specs=[
            # Activations: tiled along the batch axis, auto double-buffered.
            pl.BlockSpec((tb, IN_FEATURES), lambda i: (i, 0)),
            # Parameters: constant index_map -> VMEM-resident, no re-DMA.
            pl.BlockSpec((HIDDEN_SIZE, IN_FEATURES), lambda i: (0, 0)),
            pl.BlockSpec((HIDDEN_SIZE, 1), lambda i: (0, 0)),
            pl.BlockSpec((ACTION_NUM, HIDDEN_SIZE), lambda i: (0, 0)),
            pl.BlockSpec((ACTION_NUM, 1), lambda i: (0, 0)),
        ],
        out_specs=pl.BlockSpec((ACTION_NUM, tb), lambda i: (0, i)),
        compiler_params=pltpu.CompilerParams(
            dimension_semantics=("parallel",)),   # v7x: shard batch over 2 TCs
    )(x, w1, b1_col, w2, b2_col)

    # Tiny (2, B) -> (B, 2) transpose (8 B per row, one fused XLA op); kept in
    # the wrapper per review note — fold into the consumer if it matters.
    return out_t[:, :B].T


def init_params(key):
    """Deterministic init mirroring the PyTorch module's __init__ (PyTorch layout)."""
    k1, k2, k3, k4 = jax.random.split(key, 4)
    # weight.data.normal_(0, 0.1)
    w1 = 0.1 * jax.random.normal(k1, (HIDDEN_SIZE, IN_FEATURES), dtype=jnp.float32)
    w2 = 0.1 * jax.random.normal(k2, (ACTION_NUM, HIDDEN_SIZE), dtype=jnp.float32)
    # nn.Linear default bias init: U(-1/sqrt(fan_in), 1/sqrt(fan_in))
    bound1 = 1.0 / (IN_FEATURES ** 0.5)
    bound2 = 1.0 / (HIDDEN_SIZE ** 0.5)
    b1 = jax.random.uniform(k3, (HIDDEN_SIZE,), jnp.float32, -bound1, bound1)
    b2 = jax.random.uniform(k4, (ACTION_NUM,), jnp.float32, -bound2, bound2)
    return w1, b1, w2, b2


if __name__ == "__main__":
    key = jax.random.PRNGKey(0)
    k_param, k_x = jax.random.split(key)
    w1, b1, w2, b2 = init_params(k_param)

    compute_dtype = default_compute_dtype()          # bf16 on v6e/v7x, f32 on v5e-
    params = prepare_params(w1, b1, w2, b2, compute_dtype=compute_dtype)

    batch = 8
    x = jax.random.normal(k_x, (batch, IN_FEATURES), dtype=jnp.float32)

    out = jax.jit(mlp_forward)(x, *params)
    out = jax.block_until_ready(out)

    # Pure-JAX f32 reference with the exact sigmoid.
    ref = jax.nn.sigmoid(x @ w1.T + b1) @ w2.T + b2
    assert out.shape == (batch, ACTION_NUM)
    tol = 3e-2 if compute_dtype == jnp.bfloat16 else 5e-3
    assert jnp.allclose(out, ref, atol=tol, rtol=tol), \
        float(jnp.max(jnp.abs(out - ref)))

    print("KERNEL_OK")
</pallas_src>

<mosaic_0001>
module attributes {stable_mosaic.version = 11 : i64} {
  func.func @_mlp_kernel(%arg0: i32, %arg1: memref<128x4xf32, #tpu.memory_space<vmem>>, %arg2: memref<64x4xbf16, #tpu.memory_space<vmem>>, %arg3: memref<64x1xf32, #tpu.memory_space<vmem>>, %arg4: memref<2x64xbf16, #tpu.memory_space<vmem>>, %arg5: memref<2x1xf32, #tpu.memory_space<vmem>>, %arg6: memref<2x128xf32, #tpu.memory_space<vmem>>) attributes {dimension_semantics = [#tpu.dimension_semantics<parallel>], iteration_bounds = array<i64: 1>, scalar_prefetch = 0 : i64, scratch_operands = 0 : i64, tpu.core_type = #tpu.core_type<tc>, window_params = [{transform_indices = @transform_0, window_bounds = array<i64: 128, 4>}, {pipeline_mode = #tpu.pipeline_mode<synchronous>, transform_indices = @transform_1, window_bounds = array<i64: 64, 4>}, {pipeline_mode = #tpu.pipeline_mode<synchronous>, transform_indices = @transform_2, window_bounds = array<i64: 64, 1>}, {pipeline_mode = #tpu.pipeline_mode<synchronous>, transform_indices = @transform_3, window_bounds = array<i64: 2, 64>}, {pipeline_mode = #tpu.pipeline_mode<synchronous>, transform_indices = @transform_4, window_bounds = array<i64: 2, 1>}, {transform_indices = @transform_5, window_bounds = array<i64: 2, 128>}]} {
    %c0 = arith.constant 0 : index
    %c0_0 = arith.constant 0 : index
    %0 = vector.load %arg1[%c0, %c0_0] : memref<128x4xf32, #tpu.memory_space<vmem>>, vector<128x4xf32>
    %1 = arith.truncf %0 : vector<128x4xf32> to vector<128x4xbf16>
    %c0_1 = arith.constant 0 : index
    %c0_2 = arith.constant 0 : index
    %2 = vector.load %arg2[%c0_1, %c0_2] : memref<64x4xbf16, #tpu.memory_space<vmem>>, vector<64x4xbf16>
    %cst = arith.constant dense<0.000000e+00> : vector<64x128xf32>
    %3 = tpu.matmul %2, %1, %cst {dimension_numbers = #tpu.dot_dimension_numbers<[1], [1], [0], [0], [0, 0, 1, 0], [], []>} : vector<64x4xbf16>, vector<128x4xbf16>, vector<64x128xf32> -> vector<64x128xf32>
    %c0_3 = arith.constant 0 : index
    %c0_4 = arith.constant 0 : index
    %4 = vector.load %arg3[%c0_3, %c0_4] : memref<64x1xf32, #tpu.memory_space<vmem>>, vector<64x1xf32>
    %5 = vector.broadcast %4 : vector<64x1xf32> to vector<64x128xf32>
    %6 = arith.addf %3, %5 : vector<64x128xf32>
    %7 = arith.truncf %6 : vector<64x128xf32> to vector<64x128xbf16>
    %cst_5 = arith.constant 5.000000e-01 : bf16
    %8 = vector.broadcast %cst_5 : bf16 to vector<64x128xbf16>
    %9 = arith.mulf %7, %8 : vector<64x128xbf16>
    %10 = math.tanh %9 : vector<64x128xbf16>
    %cst_6 = arith.constant 5.000000e-01 : bf16
    %11 = vector.broadcast %cst_6 : bf16 to vector<64x128xbf16>
    %12 = arith.mulf %10, %11 : vector<64x128xbf16>
    %cst_7 = arith.constant 5.000000e-01 : bf16
    %13 = vector.broadcast %cst_7 : bf16 to vector<64x128xbf16>
    %14 = arith.addf %12, %13 : vector<64x128xbf16>
    %c0_8 = arith.constant 0 : index
    %c0_9 = arith.constant 0 : index
    %15 = vector.load %arg4[%c0_8, %c0_9] : memref<2x64xbf16, #tpu.memory_space<vmem>>, vector<2x64xbf16>
    %cst_10 = arith.constant dense<0.000000e+00> : vector<2x128xf32>
    %16 = tpu.matmul %15, %14, %cst_10 {dimension_numbers = #tpu.dot_dimension_numbers<[1], [0], [0], [1], [0, 0, 1, 1], [], []>} : vector<2x64xbf16>, vector<64x128xbf16>, vector<2x128xf32> -> vector<2x128xf32>
    %c0_11 = arith.constant 0 : index
    %c0_12 = arith.constant 0 : index
    %17 = vector.load %arg5[%c0_11, %c0_12] : memref<2x1xf32, #tpu.memory_space<vmem>>, vector<2x1xf32>
    %18 = vector.broadcast %17 : vector<2x1xf32> to vector<2x128xf32>
    %19 = arith.addf %16, %18 : vector<2x128xf32>
    %c0_13 = arith.constant 0 : index
    %c0_14 = arith.constant 0 : index
    %20 = vector.load %arg6[%c0_13, %c0_14] : memref<2x128xf32, #tpu.memory_space<vmem>>, vector<2x128xf32>
    tpu.vector_store %arg6[%c0_13, %c0_14], %19 {strides = array<i32>} : memref<2x128xf32, #tpu.memory_space<vmem>>, vector<2x128xf32>,
    return
  }
  func.func @transform_0(%arg0: i32) -> (i32, i32) {
    %c0_i32 = arith.constant 0 : i32
    %c0_i32_0 = arith.constant 0 : i32
    return %arg0, %c0_i32 : i32, i32
  }
  func.func @transform_1(%arg0: i32) -> (i32, i32) {
    %c0_i32 = arith.constant 0 : i32
    %c0_i32_0 = arith.constant 0 : i32
    %c0_i32_1 = arith.constant 0 : i32
    return %c0_i32, %c0_i32_0 : i32, i32
  }
  func.func @transform_2(%arg0: i32) -> (i32, i32) {
    %c0_i32 = arith.constant 0 : i32
    %c0_i32_0 = arith.constant 0 : i32
    %c0_i32_1 = arith.constant 0 : i32
    return %c0_i32, %c0_i32_0 : i32, i32
  }
  func.func @transform_3(%arg0: i32) -> (i32, i32) {
    %c0_i32 = arith.constant 0 : i32
    %c0_i32_0 = arith.constant 0 : i32
    %c0_i32_1 = arith.constant 0 : i32
    return %c0_i32, %c0_i32_0 : i32, i32
  }
  func.func @transform_4(%arg0: i32) -> (i32, i32) {
    %c0_i32 = arith.constant 0 : i32
    %c0_i32_0 = arith.constant 0 : i32
    %c0_i32_1 = arith.constant 0 : i32
    return %c0_i32, %c0_i32_0 : i32, i32
  }
  func.func @transform_5(%arg0: i32) -> (i32, i32) {
    %c0_i32 = arith.constant 0 : i32
    %c0_i32_0 = arith.constant 0 : i32
    return %c0_i32, %arg0 : i32, i32
  }
}

</mosaic_0001>

<bundles_post_ra>
// kernel: mlp_forward.1
= control target key start
LH: loop header
LB: loop body
LE: loop exit
PB: predicated region body
PF: predicated region fallthrough
CT: control target
= control target key end

     0   :  { %vm122_vm0 = vcmask 31744   ;;  %v387_v3 = vmov 0   ;;  %v388_v46 = vmov 0.0   ;;  %vm389_vm1 = vmmov 0   ;;  %s533_s0 = inlined_call_operand.vmem [shape: f32[128,4], index: 0, kind: input, shape index: {}]   ;;  %s534_s1 = inlined_call_operand.vmem [shape: bf16[64,4], index: 1, kind: input, shape index: {}]   ;;  %s535_s2 = inlined_call_operand.vmem [shape: f32[64,1], index: 2, kind: input, shape index: {}]   ;;  %s536_s4 = inlined_call_operand.vmem [shape: f32[2,1], index: 4, kind: input, shape index: {}]   ;;  %s537_s3 = inlined_call_operand.vmem [shape: bf16[2,64], index: 3, kind: input, shape index: {}]   ;;  %s538_s5 = inlined_call_operand.vmem [shape: f32[2,128], index: 5, kind: output, shape index: {}]  }
   0x1   :  { %v22_v0 = vld [vmem:[%s533_s0] sm:$0xff]  ;;  %v23_v1 = vld [vmem:[%s533_s0 + $0x8] sm:$0xff]  ;;  %v24_v2 = vld [vmem:[%s533_s0 + $0x10] sm:$0xff]  ;;  %373 = vset.pattern.permute.xlu0 %v387_v3  ;;  %374 = vset.pattern.permute.xlu1 %v387_v3  ;;  %vm251_vm2 = vcmask 523264  }
   0x2   :  { %v38_v4 = vpack.c.bf16 %v23_v1, %v22_v0  ;;  %v25_v5 = vld [vmem:[%s533_s0 + $0x18] sm:$0xff]  ;;  %v26_v8 = vld [vmem:[%s533_s0 + $0x20] sm:$0xff]  ;;  %v27_v9 = vld [vmem:[%s533_s0 + $0x28] sm:$0xff]  ;;  %350 = vmatprep.subr.bf16.mxu1 %v388_v46  ;;  %358 = vmatprep.mubr.msk.bf16.mxu1 %vm389_vm1, %v388_v46 }
   0x3   :  { %v39_v6 = vpack.c.bf16 %v25_v5, %v24_v2  ;;  %v375_v10 = vld [vmem:[%s534_s1] sm:$0xff]   ;;  %v40_v12 = vpack.c.bf16 %v27_v9, %v26_v8  ;;  %v56_v14 = vld [vmem:[%s535_s2 + $0x10] sm:$0xff]  ;;  %v55_v15 = vld [vmem:[%s535_s2 + $0x8] sm:$0xff] }
   0x4   :  { %362 = vmatprep.subr.msk.bf16.mxu0 %vm122_vm0, %v38_v4  ;;  %v136_v7 = vsel %vm122_vm0, %v38_v4, 0  ;;  %342 = vmatprep.mubr.msk.bf16.mxu0 %vm122_vm0, %v375_v10  ;;  %v54_v13 = vld [vmem:[%s535_s2] sm:$0xff]  ;;  %v57_v16 = vld [vmem:[%s535_s2 + $0x18] sm:$0xff]  ;;  %v28_v17 = vld [vmem:[%s533_s0 + $0x30] sm:$0xff] }
   0x5   :  { %327 = vmatpush3.bf16.xpose.msra.mxu0 %v136_v7  ;;  %v139_v11 = vsel %vm122_vm0, %v39_v6, 0  ;;  %64 = vperm.xlu0 %373, %v54_v13   ;;  %v29_v18 = vld [vmem:[%s533_s0 + $0x38] sm:$0xff]  ;;  %v58_v19 = vld [vmem:[%s535_s2 + $0x20] sm:$0xff]  ;;  %v59_v20 = vld [vmem:[%s535_s2 + $0x28] sm:$0xff]  ;;  %v142_v21 = vsel %vm122_vm0, %v40_v12, 0 }
   0x6   :  { %363 = vmatprep.subr.msk.bf16.mxu0 %vm122_vm0, %v39_v6  ;;  %74 = vperm.xlu1 %374, %v56_v14   ;;  %v41_v22 = vpack.c.bf16 %v29_v18, %v28_v17  ;;  %v60_v23 = vld [vmem:[%s535_s2 + $0x30] sm:$0xff]  ;;  %v61_v24 = vld [vmem:[%s535_s2 + $0x38] sm:$0xff]  ;;  %v30_v25 = vld [vmem:[%s533_s0 + $0x40] sm:$0xff] }
   0x7   :  { %v31_v26 = vld [vmem:[%s533_s0 + $0x48] sm:$0xff]  ;;  %v245_v27 = vld [vmem:[%s536_s4] sm:$0x3]  ;;  %v32_v30 = vld [vmem:[%s533_s0 + $0x50] sm:$0xff] }
   0x8   :  { %v145_v28 = vsel %vm122_vm0, %v41_v22, 0  ;;  %v42_v29 = vpack.c.bf16 %v31_v26, %v30_v25  ;;  %v33_v31 = vld [vmem:[%s533_s0 + $0x58] sm:$0xff]  ;;  %v34_v34 = vld [vmem:[%s533_s0 + $0x60] sm:$0xff]  ;;  %v35_v35 = vld [vmem:[%s533_s0 + $0x68] sm:$0xff] }
   0x9   :  { %69 = vperm.xlu0 %373, %v55_v15   ;;  %v43_v33 = vpack.c.bf16 %v33_v31, %v32_v30  ;;  %v44_v37 = vpack.c.bf16 %v35_v35, %v34_v34  ;;  %v36_v38 = vld [vmem:[%s533_s0 + $0x70] sm:$0xff]  ;;  %v37_v39 = vld [vmem:[%s533_s0 + $0x78] sm:$0xff]  ;;  %v376_v43 = vld [vmem:[%s534_s1 + $0x8] sm:$0xff]  }
   0xa   :  { %79 = vperm.xlu1 %374, %v57_v16   ;;  %v148_v32 = vsel %vm122_vm0, %v42_v29, 0  ;;  %v45_v41 = vpack.c.bf16 %v37_v39, %v36_v38  ;;  %v377_v44 = vld [vmem:[%s534_s1 + $0x10] sm:$0xff]   ;;  %v378_v45 = vld [vmem:[%s534_s1 + $0x18] sm:$0xff]  }
   0xb   :  { %v151_v36 = vsel %vm122_vm0, %v43_v33, 0  ;;  %v154_v40 = vsel %vm122_vm0, %v44_v37, 0 }
   0xc   :  { %v157_v42 = vsel %vm122_vm0, %v45_v41, 0 }
   0xd   :  { %329 = vmatpush3.bf16.xpose.msra.mxu0 %v139_v11  ;;  %84 = vperm.xlu0 %373, %v58_v19  }
   0xe   :  { %364 = vmatprep.subr.msk.bf16.mxu0 %vm122_vm0, %v40_v12  ;;  %89 = vperm.xlu1 %374, %v59_v20  }
  0x11   :  { %94 = vperm.xlu0 %373, %v60_v23  }
  0x12   :  { %99 = vperm.xlu1 %374, %v61_v24  }
  0x15   :  { %331 = vmatpush3.bf16.xpose.msra.mxu0 %v142_v21  ;;  %248 = vperm.xlu0 %373, %v245_v27   ;;  %v244_v27 = vld [vmem:[%s537_s3] sm:$0x1] }
  0x16   :  { %365 = vmatprep.subr.msk.bf16.mxu0 %vm122_vm0, %v41_v22 }
  0x1d   :  { %333 = vmatpush3.bf16.xpose.msra.mxu0 %v145_v28 }
  0x1e   :  { %366 = vmatprep.subr.msk.bf16.mxu0 %vm122_vm0, %v42_v29 }
  0x25   :  { %335 = vmatpush3.bf16.xpose.msra.mxu0 %v148_v32 }
  0x26   :  { %367 = vmatprep.subr.msk.bf16.mxu0 %vm122_vm0, %v43_v33 }
  0x2d   :  { %337 = vmatpush3.bf16.xpose.msra.mxu0 %v151_v36 }
  0x2e   :  { %368 = vmatprep.subr.msk.bf16.mxu0 %vm122_vm0, %v44_v37 }
  0x35   :  { %339 = vmatpush3.bf16.xpose.msra.mxu0 %v154_v40 }
  0x36   :  { %369 = vmatprep.subr.msk.bf16.mxu0 %vm122_vm0, %v45_v41 }
  0x3d   :  { %341 = vmatpush3.bf16.xpose.msra.mxu0 %v157_v42 }
  0x44   :  { %343 = vmatmul.mubr.msk.bf16.vlgmr.msra.gmra.mrb[0].mxu0 %vm122_vm0, %v376_v43 }
  0x45   :  { %346 = vmatprep.mubr.msk.bf16.mxu0 %vm122_vm0, %v377_v44 }
  0x4c   :  { %347 = vmatmul.mubr.msk.bf16.gmra.mrb[4].mxu0 %vm122_vm0, %v378_v45 }
  0x84   :  { %v65_v47 = vpop.permute.xlu0 %64 }
  0x85   :  { %v75_v48 = vpop.permute.xlu1 %74 }
  0x88   :  { %v70_v49 = vpop.permute.xlu0 %69 }
  0x89   :  { %v80_v50 = vpop.permute.xlu1 %79 }
  0x8c   :  { %v85_v54 = vpop.permute.xlu0 %84 }
  0x8d   :  { %v90_v58 = vpop.permute.xlu1 %89 }
  0x90   :  { %v95_v2 = vpop.permute.xlu0 %94 }
  0x91   :  { %v100_v4 = vpop.permute.xlu1 %99 }
  0x94   :  { %v249_v28 = vpop.permute.xlu0 %248 }
 0x117   :  { %v344_v51 = vpop.f32.mrb[0].mxu0 }
 0x118   :  { %v193_v52 = vpop.f32.mrb[1].mxu0  ;;  %v202_v55 = vadd.f32 %v344_v51, %v75_v48 }
 0x119   :  { %v345_v53 = vpop.f32.mrb[2].mxu0  ;;  %v194_v59 = vadd.f32 %v193_v52, %v65_v47 }
 0x11a   :  { %v205_v56 = vadd.f32 %v345_v53, %v80_v50  ;;  %v196_v57 = vpop.f32.mrb[3].mxu0 }
 0x11b   :  { %v197_v60 = vadd.f32 %v196_v57, %v70_v49 }
 0x11c   :  { %v225_v61 = vpack.c.bf16 %v205_v56, %v202_v55 }
 0x11d   :  { %v224_v62 = vpack.c.bf16 %v197_v60, %v194_v59 }
 0x11e   :  { %v229_v63 = vmul.bf16 1056980736, %v225_v61 }
 0x11f   :  { %v228_v0 = vmul.bf16 1056980736, %v224_v62  ;;  %v348_v1 = vpop.f32.mrb[4].mxu0 }
 0x120   :  { %379 = vtanh.bf16 %v229_v63  ;;  %v209_v3 = vpop.f32.mrb[5].mxu0  ;;  %v218_v6 = vadd.f32 %v348_v1, %v95_v2 }
 0x121   :  { %381 = vtanh.bf16 %v228_v0  ;;  %v349_v5 = vpop.f32.mrb[6].mxu0  ;;  %v210_v9 = vadd.f32 %v209_v3, %v85_v54 }
 0x122   :  { %v221_v7 = vadd.f32 %v349_v5, %v100_v4  ;;  %v212_v8 = vpop.f32.mrb[7].mxu0 }
 0x123   :  { %v213_v10 = vadd.f32 %v212_v8, %v90_v58 }
 0x124   :  { %v227_v11 = vpack.c.bf16 %v221_v7, %v218_v6 }
 0x125   :  { %v226_v12 = vpack.c.bf16 %v213_v10, %v210_v9 }
 0x126   :  { %v231_v13 = vmul.bf16 1056980736, %v227_v11 }
 0x127   :  { %v230_v14 = vmul.bf16 1056980736, %v226_v12 }
 0x128   :  { %383 = vtanh.bf16 %v231_v13 }
 0x129   :  { %385 = vtanh.bf16 %v230_v14 }
 0x12b   :  { %v380_v15 = vpop.eup %379 }
 0x12c   :  { %v382_v16 = vpop.eup %381  ;;  %v237_v19 = vmul.bf16 1056980736, %v380_v15 }
 0x12d   :  { %v236_v17 = vmul.bf16 1056980736, %v382_v16 }
 0x12e   :  { %v241_v21 = vadd.bf16 1056980736, %v237_v19 }
 0x12f   :  { %v240_v18 = vadd.bf16 1056980736, %v236_v17 }
 0x131   :  { %351 = vmatpush3.bf16.msra.mxu1 %v240_v18 }
 0x132   :  { %352 = vmatprep.subr.bf16.mxu1 %v388_v46 }
 0x133   :  { %v384_v20 = vpop.eup %383 }
 0x134   :  { %v386_v22 = vpop.eup %385  ;;  %v239_v25 = vmul.bf16 1056980736, %v384_v20 }
 0x135   :  { %353 = vmatpush3.bf16.msra.mxu1 %v241_v21  ;;  %v238_v23 = vmul.bf16 1056980736, %v386_v22 }
 0x136   :  { %354 = vmatprep.subr.bf16.mxu1 %v388_v46  ;;  %v243_v26 = vadd.bf16 1056980736, %v239_v25 }
 0x137   :  { %v242_v24 = vadd.bf16 1056980736, %v238_v23 }
 0x139   :  { %355 = vmatpush3.bf16.msra.mxu1 %v242_v24 }
 0x13a   :  { %356 = vmatprep.subr.bf16.mxu1 %v388_v46 }
 0x13d   :  { %357 = vmatpush3.bf16.msra.mxu1 %v243_v26 }
 0x140   :  { %359 = vmatmul.mubr.msk.bf16.vlgmr.msra.gmra.mrb[0].mxu1 %vm251_vm2, %v244_v27 }
 0x213   :  { %v289_v29 = vpop.f32.mrb[0].mxu1 }
 0x214   :  { %v290_v30 = vadd.f32 %v289_v29, %v249_v28  ;;  %v360_v31 = vpop.f32.mrb[1].mxu1 }
 0x215   :  { %v292_v32 = vpop.f32.mrb[2].mxu1 }
 0x216   :  { %295 = vst [vmem:[%s538_s5] sm:$0x3] %v290_v30  ;;  %v361_v33 = vpop.f32.mrb[3].mxu1 }

</bundles_post_ra>
